<compile_context>
chip_gen: v7x
topology: tpu7x:2x2x1
jax: 0.10.0
libtpu: 0.0.40
codegen_flags: <defaults>
</compile_context>

<pallas_src>
import jax
import jax.numpy as jnp
from jax.experimental import pallas as pl
from jax.experimental.pallas import tpu as pltpu


def _aug_lagrangian_kernel(wa_ref, x_ref, coef_ref, lmd_ref, l_ref):
    """Fused, batched augmented-Lagrangian forward (batch on the lane axis).

    Packed layout (NP = 128-padded N+M rows, DP = 8-padded D+1 cols):
        wa   = [ W.T | target ]      rows [0, N)          (NP, DP)
               [ A.T |   b    ]      rows [N, N+M)
               [  0  |   0    ]      padded rows
        x    = [ x.T ]               rows [0, D)          (DP, BB)
               [ -1  ]               row D (bias)
               [  0  ]               padded rows
        y = wa @ x                   -> rows [0,N) = resid.T, [N,N+M) = C.T, pad = 0
        coef = 0.5 (resid rows) | 0.5*pf (constraint rows) | 0 (pad)     (NP, 1)
        lmd  = 0   (resid rows) | lmd   (constraint rows)  | 0 (pad)     (NP, 1)

        L_b = sum_rows (coef * y + lmd) * y
            = 0.5*||resid||^2 + lmd @ C + 0.5*pf*||C||^2      per batch lane
    """
    y = jnp.dot(wa_ref[...], x_ref[...],
                preferred_element_type=jnp.float32)            # (NP, BB) one MXU pass
    z = (coef_ref[...] * y + lmd_ref[...]) * y                 # fused VPU expression
    l_ref[...] = jnp.sum(z, axis=0, keepdims=True)             # (1, BB) lane-dense store


def unconstrained_model_forward(x, W, target, A, b, lmd, pf, *, block_b=128):
    """Batched forward. x: (B, D); W: (D, N); target: (N,); A: (D, M); b, lmd: (M,).

    Returns L of shape (B,), one augmented-Lagrangian value per candidate input.
    """
    x = jnp.asarray(x, jnp.float32)
    B, D = x.shape
    N = W.shape[1]
    M = A.shape[1]
    NP = int(pl.cdiv(N + M, 128)) * 128        # packed (resid + constraint) rows
    DP = int(pl.cdiv(D + 1, 8)) * 8            # feature dim + bias row, sublane-aligned

    BB = block_b
    B_pad = int(pl.cdiv(B, BB)) * BB

    # --- host-side packing (pf and lmd are data -> no recompile across ALM steps) ---
    x_aug = jnp.zeros((DP, B_pad), jnp.float32)
    x_aug = x_aug.at[:D, :B].set(x.T)
    x_aug = x_aug.at[D, :].set(-1.0)           # bias row: folds -target / -b into matmul

    waT = jnp.zeros((NP, DP), jnp.float32)
    waT = waT.at[:N, :D].set(jnp.asarray(W, jnp.float32).T)
    waT = waT.at[N:N + M, :D].set(jnp.asarray(A, jnp.float32).T)
    waT = waT.at[:N, D].set(jnp.asarray(target, jnp.float32).reshape(-1))
    waT = waT.at[N:N + M, D].set(jnp.asarray(b, jnp.float32).reshape(-1))

    pf = jnp.asarray(pf, jnp.float32)
    coef = jnp.zeros((NP, 1), jnp.float32)
    coef = coef.at[:N, 0].set(0.5)
    coef = coef.at[N:N + M, 0].set(0.5 * pf)

    lmdT = jnp.zeros((NP, 1), jnp.float32)
    lmdT = lmdT.at[N:N + M, 0].set(jnp.asarray(lmd, jnp.float32).reshape(-1))

    L = pl.pallas_call(
        _aug_lagrangian_kernel,
        out_shape=jax.ShapeDtypeStruct((1, B_pad), jnp.float32),
        grid=(B_pad // BB,),
        in_specs=[
            pl.BlockSpec((NP, DP), lambda i: (0, 0)),   # packed [W.T|target ; A.T|b]
            pl.BlockSpec((DP, BB), lambda i: (0, i)),   # x.T + bias row (batch on lanes)
            pl.BlockSpec((NP, 1), lambda i: (0, 0)),    # coef column (carries 0.5*pf)
            pl.BlockSpec((NP, 1), lambda i: (0, 0)),    # lmd column
        ],
        out_specs=pl.BlockSpec((1, BB), lambda i: (0, i)),   # lane-dense output row
        compiler_params=pltpu.CompilerParams(
            dimension_semantics=("parallel",)),              # shard batch across TCs
    )(waT, x_aug, coef, lmdT)

    return L[0, :B]


def _reference_forward(x, W, target, A, b, lmd, pf):
    """Pure-JAX reference mirroring the PyTorch semantics exactly (per batch row)."""
    resid = x @ W - target                       # (B, N)
    R = 0.5 * jnp.sum(resid * resid, axis=-1)    # (B,)
    C = x @ A - b                                # (B, M)
    penalty = jnp.sum(C * C, axis=-1)            # square(norm(C)) per row
    return R + C @ lmd + pf * penalty / 2.0


if __name__ == "__main__":
    # Small shapes: feature dim D=32, residual dim N=16, M=8 constraints,
    # B=128 batched candidate evaluations (ALM line-search style).
    D, N, M = 32, 16, 8
    B = 128
    pf = 0.25  # penalty_factor

    key = jax.random.PRNGKey(0)
    kx, kw, kt, ka, kb = jax.random.split(key, 5)

    x = jax.random.normal(kx, (B, D), dtype=jnp.float32)
    W = jax.random.normal(kw, (D, N), dtype=jnp.float32) / jnp.sqrt(D)
    target = jax.random.normal(kt, (N,), dtype=jnp.float32)
    A = jax.random.normal(ka, (D, M), dtype=jnp.float32) / jnp.sqrt(D)
    b = jax.random.normal(kb, (M,), dtype=jnp.float32)

    # First forward: lmd does not exist yet -> zeros((C.shape[0],)).
    lmd = jnp.zeros((M,), dtype=jnp.float32)
    # TODO(synk): update_lambda / update_penalty_factor are host-side state mutations
    # on the optimizer object; they stay in plain Python/JAX (mimicked below).

    L = jax.block_until_ready(unconstrained_model_forward(x, W, target, A, b, lmd, pf))
    L_ref = _reference_forward(x, W, target, A, b, lmd, pf)
    assert jnp.allclose(L, L_ref, rtol=1e-4, atol=1e-4), (L[:4], L_ref[:4])

    # After update_lambda / update_penalty_factor: new lmd and pf hit the SAME compiled
    # kernel (both flow through packed data columns -> no recompile).
    err = (x @ A - b)[0]                 # some constraint error
    lmd2 = lmd + err * pf                # mimics update_lambda(error)
    pf2 = min(pf * 2.0, 1e6)             # mimics update_penalty_factor(step, safe_guard)
    L2 = jax.block_until_ready(unconstrained_model_forward(x, W, target, A, b, lmd2, pf2))
    L2_ref = _reference_forward(x, W, target, A, b, lmd2, pf2)
    assert jnp.allclose(L2, L2_ref, rtol=1e-4, atol=1e-4), (L2[:4], L2_ref[:4])

    # Single-input forward (the module's nominal usage): B=1, padded internally.
    L3 = jax.block_until_ready(
        unconstrained_model_forward(x[:1], W, target, A, b, lmd2, pf2))
    assert jnp.allclose(L3, L2_ref[:1], rtol=1e-4, atol=1e-4), (L3, L2_ref[:1])

    # Non-multiple batch (exercises padding path on both ends).
    L4 = jax.block_until_ready(
        unconstrained_model_forward(x[:50], W, target, A, b, lmd2, pf2))
    assert jnp.allclose(L4, L2_ref[:50], rtol=1e-4, atol=1e-4)

    print("KERNEL_OK")
</pallas_src>

<mosaic_0001>
module attributes {stable_mosaic.version = 11 : i64} {
  func.func @_aug_lagrangian_kernel(%arg0: i32, %arg1: memref<128x40xf32, #tpu.memory_space<vmem>>, %arg2: memref<40x128xf32, #tpu.memory_space<vmem>>, %arg3: memref<128x1xf32, #tpu.memory_space<vmem>>, %arg4: memref<128x1xf32, #tpu.memory_space<vmem>>, %arg5: memref<1x128xf32, #tpu.memory_space<vmem>>) attributes {dimension_semantics = [#tpu.dimension_semantics<parallel>], iteration_bounds = array<i64: 1>, scalar_prefetch = 0 : i64, scratch_operands = 0 : i64, tpu.core_type = #tpu.core_type<tc>, window_params = [{pipeline_mode = #tpu.pipeline_mode<synchronous>, transform_indices = @transform_0, window_bounds = array<i64: 128, 40>}, {transform_indices = @transform_1, window_bounds = array<i64: 40, 128>}, {pipeline_mode = #tpu.pipeline_mode<synchronous>, transform_indices = @transform_2, window_bounds = array<i64: 128, 1>}, {pipeline_mode = #tpu.pipeline_mode<synchronous>, transform_indices = @transform_3, window_bounds = array<i64: 128, 1>}, {transform_indices = @transform_4, window_bounds = array<i64: 1, 128>}]} {
    %c0 = arith.constant 0 : index
    %c0_0 = arith.constant 0 : index
    %0 = vector.load %arg1[%c0, %c0_0] : memref<128x40xf32, #tpu.memory_space<vmem>>, vector<128x40xf32>
    %c0_1 = arith.constant 0 : index
    %c0_2 = arith.constant 0 : index
    %1 = vector.load %arg2[%c0_1, %c0_2] : memref<40x128xf32, #tpu.memory_space<vmem>>, vector<40x128xf32>
    %cst = arith.constant dense<0.000000e+00> : vector<128x128xf32>
    %2 = tpu.matmul %0, %1, %cst {dimension_numbers = #tpu.dot_dimension_numbers<[1], [0], [0], [1], [0, 0, 1, 1], [], []>} : vector<128x40xf32>, vector<40x128xf32>, vector<128x128xf32> -> vector<128x128xf32>
    %c0_3 = arith.constant 0 : index
    %c0_4 = arith.constant 0 : index
    %3 = vector.load %arg3[%c0_3, %c0_4] : memref<128x1xf32, #tpu.memory_space<vmem>>, vector<128x1xf32>
    %4 = vector.broadcast %3 : vector<128x1xf32> to vector<128x128xf32>
    %5 = arith.mulf %4, %2 : vector<128x128xf32>
    %c0_5 = arith.constant 0 : index
    %c0_6 = arith.constant 0 : index
    %6 = vector.load %arg4[%c0_5, %c0_6] : memref<128x1xf32, #tpu.memory_space<vmem>>, vector<128x1xf32>
    %7 = vector.broadcast %6 : vector<128x1xf32> to vector<128x128xf32>
    %8 = arith.addf %5, %7 : vector<128x128xf32>
    %9 = arith.mulf %8, %2 : vector<128x128xf32>
    %cst_7 = arith.constant dense<0.000000e+00> : vector<128xf32>
    %10 = vector.multi_reduction <add>, %9, %cst_7 [0] : vector<128x128xf32> to vector<128xf32>
    %11 = vector.shape_cast %10 : vector<128xf32> to vector<1x128xf32>
    %c0_8 = arith.constant 0 : index
    %c0_9 = arith.constant 0 : index
    %12 = vector.load %arg5[%c0_8, %c0_9] : memref<1x128xf32, #tpu.memory_space<vmem>>, vector<1x128xf32>
    tpu.vector_store %arg5[%c0_8, %c0_9], %11 {strides = array<i32>} : memref<1x128xf32, #tpu.memory_space<vmem>>, vector<1x128xf32>,
    return
  }
  func.func @transform_0(%arg0: i32) -> (i32, i32) {
    %c0_i32 = arith.constant 0 : i32
    %c0_i32_0 = arith.constant 0 : i32
    %c0_i32_1 = arith.constant 0 : i32
    return %c0_i32, %c0_i32_0 : i32, i32
  }
  func.func @transform_1(%arg0: i32) -> (i32, i32) {
    %c0_i32 = arith.constant 0 : i32
    %c0_i32_0 = arith.constant 0 : i32
    return %c0_i32, %arg0 : i32, i32
  }
  func.func @transform_2(%arg0: i32) -> (i32, i32) {
    %c0_i32 = arith.constant 0 : i32
    %c0_i32_0 = arith.constant 0 : i32
    %c0_i32_1 = arith.constant 0 : i32
    return %c0_i32, %c0_i32_0 : i32, i32
  }
  func.func @transform_3(%arg0: i32) -> (i32, i32) {
    %c0_i32 = arith.constant 0 : i32
    %c0_i32_0 = arith.constant 0 : i32
    %c0_i32_1 = arith.constant 0 : i32
    return %c0_i32, %c0_i32_0 : i32, i32
  }
  func.func @transform_4(%arg0: i32) -> (i32, i32) {
    %c0_i32 = arith.constant 0 : i32
    %c0_i32_0 = arith.constant 0 : i32
    return %c0_i32, %arg0 : i32, i32
  }
}

</mosaic_0001>

<bundles_post_ra>
// kernel: tpu_custom_call.1
= control target key start
LH: loop header
LB: loop body
LE: loop exit
PB: predicated region body
PF: predicated region fallthrough
CT: control target
= control target key end

     0   :  { %v622_v4 = vmov 0   ;;  %vm39_vm0 = vcmask 326656   ;;  %s836_s0 = inlined_call_operand.vmem [shape: f32[128,40], index: 0, kind: input, shape index: {}]   ;;  %s837_s1 = inlined_call_operand.vmem [shape: f32[40,128], index: 1, kind: input, shape index: {}]   ;;  %s838_s2 = inlined_call_operand.vmem [shape: f32[128,1], index: 2, kind: input, shape index: {}]   ;;  %s839_s3 = inlined_call_operand.vmem [shape: f32[128,1], index: 3, kind: input, shape index: {}]   ;;  %s840_s4 = inlined_call_operand.hbm [shape: f32[1,128], index: 4, kind: output, shape index: {}]  }
   0x1   :  { %v34_v0 = vld [vmem:[%s837_s1] sm:$0xff]  ;;  %v35_v1 = vld [vmem:[%s837_s1 + $0x8] sm:$0xff]  ;;  %v36_v2 = vld [vmem:[%s837_s1 + $0x10] sm:$0xff]  ;;  %596 = vset.pattern.permute.xlu0 %v622_v4  ;;  %597 = vset.pattern.permute.xlu1 %v622_v4 }
   0x2   :  { %v580_v3 = vpack.c.bf16 %v35_v1, %v34_v0  ;;  %v37_v5 = vld [vmem:[%s837_s1 + $0x18] sm:$0xff]  ;;  %v233_v6 = vld [vmem:[%s838_s2] sm:$0xff]  ;;  %v235_v7 = vld [vmem:[%s838_s2 + $0x10] sm:$0xff] }
   0x3   :  { %v584_v8 = vpack.c.bf16 %v37_v5, %v36_v2  ;;  %251 = vperm.xlu0 %596, %v233_v6   ;;  %261 = vperm.xlu1 %597, %v235_v7   ;;  %v234_v9 = vld [vmem:[%s838_s2 + $0x8] sm:$0xff]  ;;  %v18_v10 = vld [vmem:[%s836_s0] sm:$0xff]  ;;  %v236_v12 = vld [vmem:[%s838_s2 + $0x18] sm:$0xff] }
   0x4   :  { %581 = vmatprep.subr.bf16.mxu0 %v580_v3  ;;  %588 = vmatprep.subr.bf16.mxu1 %v580_v3  ;;  %v26_v11 = vld [vmem:[%s836_s0 + $0x40] sm:$0xff]  ;;  %v346_v15 = vld [vmem:[%s839_s3 + $0x8] sm:$0xff]  ;;  %v20_v18 = vld [vmem:[%s836_s0 + $0x10] sm:$0xff] }
   0x5   :  { %583 = vmatpush3.bf16.msra.mxu0 %v580_v3  ;;  %591 = vmatpush3.bf16.msra.mxu1 %v580_v3  ;;  %v38_v13 = vld [vmem:[%s837_s1 + $0x20] sm:$0xff]  ;;  %v19_v16 = vld [vmem:[%s836_s0 + $0x8] sm:$0xff]  ;;  %v28_v19 = vld [vmem:[%s836_s0 + $0x50] sm:$0xff] }
   0x6   :  { %585 = vmatprep.subr.bf16.mxu0 %v584_v8  ;;  %589 = vmatprep.subr.bf16.mxu1 %v584_v8  ;;  %v345_v14 = vld [vmem:[%s839_s3] sm:$0xff]  ;;  %v27_v17 = vld [vmem:[%s836_s0 + $0x48] sm:$0xff]  ;;  %v347_v20 = vld [vmem:[%s839_s3 + $0x10] sm:$0xff] }
   0x7   :  { %256 = vperm.xlu0 %596, %v234_v9   ;;  %556 = vmatprep.mubr.msk.f32.mxu0 %vm39_vm0, %v18_v10  ;;  %v237_v21 = vld [vmem:[%s838_s2 + $0x20] sm:$0xff]  ;;  %v21_v22 = vld [vmem:[%s836_s0 + $0x18] sm:$0xff]  ;;  %v238_v27 = vld [vmem:[%s838_s2 + $0x28] sm:$0xff] }
   0x8   :  { %568 = vmatprep.mubr.msk.f32.mxu1 %vm39_vm0, %v26_v11  ;;  %266 = vperm.xlu1 %597, %v236_v12   ;;  %v29_v23 = vld [vmem:[%s836_s0 + $0x58] sm:$0xff]  ;;  %v22_v24 = vld [vmem:[%s836_s0 + $0x20] sm:$0xff] }
   0x9   :  { %587 = vmatpush3.bf16.msra.mxu0 %v584_v8  ;;  %592 = vmatpush3.bf16.msra.mxu1 %v584_v8  ;;  %v30_v25 = vld [vmem:[%s836_s0 + $0x60] sm:$0xff]  ;;  %v348_v26 = vld [vmem:[%s839_s3 + $0x18] sm:$0xff] }
   0xa   :  { %554 = vmatprep.subr.mxu0 %v38_v13  ;;  %590 = vmatprep.subr.mxu1 %v38_v13 }
   0xb   :  { %363 = vperm.xlu0 %596, %v345_v14  }
   0xc   :  { %368 = vperm.xlu1 %597, %v346_v15  }
   0xd   :  { %555 = vmatpush3.msra.mxu0 %v38_v13  ;;  %593 = vmatpush3.msra.mxu1 %v38_v13 }
   0xe   :  { %557 = vmatmul.mubr.msk.f32.vlgmr.msra.gmra.mrb[0].mxu0 %vm39_vm0, %v19_v16  ;;  %569 = vmatmul.mubr.msk.f32.vlgmr.msra.gmra.mrb[0].mxu1 %vm39_vm0, %v27_v17 }
   0xf   :  { %559 = vmatprep.mubr.msk.f32.mxu0 %vm39_vm0, %v20_v18  ;;  %571 = vmatprep.mubr.msk.f32.mxu1 %vm39_vm0, %v28_v19 }
  0x10   :  { %373 = vperm.xlu0 %596, %v347_v20   ;;  %271 = vperm.xlu1 %597, %v237_v21  }
  0x12   :  { %560 = vmatmul.mubr.msk.f32.gmra.mrb[2].mxu0 %vm39_vm0, %v21_v22  ;;  %572 = vmatmul.mubr.msk.f32.gmra.mrb[2].mxu1 %vm39_vm0, %v29_v23 }
  0x13   :  { %9 = vsyncpa [#allocation3], 0  ;;  %562 = vmatprep.mubr.msk.f32.mxu0 %vm39_vm0, %v22_v24  ;;  %574 = vmatprep.mubr.msk.f32.mxu1 %vm39_vm0, %v30_v25  ;;  %v23_v28 = vld [vmem:[%s836_s0 + $0x28] sm:$0xff]  ;;  %v24_v30 = vld [vmem:[%s836_s0 + $0x30] sm:$0xff] }
  0x14   :  { %v31_v29 = vld [vmem:[%s836_s0 + $0x68] sm:$0xff]  ;;  %378 = vperm.xlu0 %596, %v348_v26   ;;  %v32_v31 = vld [vmem:[%s836_s0 + $0x70] sm:$0xff]  ;;  %276 = vperm.xlu1 %597, %v238_v27   ;;  %v349_v32 = vld [vmem:[%s839_s3 + $0x20] sm:$0xff] }
  0x15   :  { %v239_v33 = vld [vmem:[%s838_s2 + $0x30] sm:$0xff]  ;;  %v25_v34 = vld [vmem:[%s836_s0 + $0x38] sm:$0xff]  ;;  %v350_v36 = vld [vmem:[%s839_s3 + $0x28] sm:$0xff] }
  0x16   :  { %563 = vmatmul.mubr.msk.f32.gmra.mrb[4].mxu0 %vm39_vm0, %v23_v28  ;;  %575 = vmatmul.mubr.msk.f32.gmra.mrb[4].mxu1 %vm39_vm0, %v31_v29  ;;  %v33_v35 = vld [vmem:[%s836_s0 + $0x78] sm:$0xff]  ;;  %v351_v38 = vld [vmem:[%s839_s3 + $0x30] sm:$0xff]  ;;  %v241_v39 = vld [vmem:[%s838_s2 + $0x40] sm:$0xff] }
  0x17   :  { %565 = vmatprep.mubr.msk.f32.mxu0 %vm39_vm0, %v24_v30  ;;  %577 = vmatprep.mubr.msk.f32.mxu1 %vm39_vm0, %v32_v31  ;;  %v240_v37 = vld [vmem:[%s838_s2 + $0x38] sm:$0xff]  ;;  %v242_v41 = vld [vmem:[%s838_s2 + $0x48] sm:$0xff]  ;;  %v353_v42 = vld [vmem:[%s839_s3 + $0x40] sm:$0xff] }
  0x18   :  { %383 = vperm.xlu0 %596, %v349_v32   ;;  %281 = vperm.xlu1 %597, %v239_v33   ;;  %v352_v40 = vld [vmem:[%s839_s3 + $0x38] sm:$0xff]  ;;  %v243_v43 = vld [vmem:[%s838_s2 + $0x50] sm:$0xff]  ;;  %v354_v44 = vld [vmem:[%s839_s3 + $0x48] sm:$0xff] }
  0x19   :  { %v244_v45 = vld [vmem:[%s838_s2 + $0x58] sm:$0xff]  ;;  %v355_v46 = vld [vmem:[%s839_s3 + $0x50] sm:$0xff]  ;;  %v245_v47 = vld [vmem:[%s838_s2 + $0x60] sm:$0xff] }
  0x1a   :  { %566 = vmatmul.mubr.msk.f32.gmra.mrb[6].mxu0 %vm39_vm0, %v25_v34  ;;  %578 = vmatmul.mubr.msk.f32.gmra.mrb[6].mxu1 %vm39_vm0, %v33_v35  ;;  %v356_v48 = vld [vmem:[%s839_s3 + $0x58] sm:$0xff]  ;;  %v246_v49 = vld [vmem:[%s838_s2 + $0x68] sm:$0xff]  ;;  %v357_v50 = vld [vmem:[%s839_s3 + $0x60] sm:$0xff] }
  0x1b   :  { %v247_v51 = vld [vmem:[%s838_s2 + $0x70] sm:$0xff]  ;;  %v358_v52 = vld [vmem:[%s839_s3 + $0x68] sm:$0xff]  ;;  %v248_v53 = vld [vmem:[%s838_s2 + $0x78] sm:$0xff]  ;;  %s623_s2 = smov [#allocation2]  }
  0x1c   :  { %388 = vperm.xlu0 %596, %v350_v36   ;;  %286 = vperm.xlu1 %597, %v240_v37   ;;  %v359_v54 = vld [vmem:[%s839_s3 + $0x70] sm:$0xff]  ;;  %v360_v55 = vld [vmem:[%s839_s3 + $0x78] sm:$0xff]  ;;  %s501_s3 = sshll.u32 %s623_s2, 4  ;;  %s502_s3 = int_to_ptr.vmem [resolvable:$true] %s501_s3 }
  0x1d   :  { %s598_s12 = scalar_lea.vmem %s502_s3, 16  ;;  %s602_s13 = scalar_lea.vmem %s502_s3, 32 }
  0x1e   :  { %p599_p0 = scmp.ne.s32.totalorder %s502_s3, %s598_s12  ;;  %p603_p1 = scmp.lt.s32.totalorder %s502_s3, %s502_s3 }
  0x1f   :  { %p604_p2 = scmp.lt.s32.totalorder %s602_s13, %s598_s12 }
  0x20   :  { %393 = vperm.xlu0 %596, %v351_v38   ;;  %291 = vperm.xlu1 %597, %v241_v39  }
  0x21   :  { %p605_p3 = por %p604_p2, %p603_p1 }
  0x23   :  { %p606_p4 = pnand %p605_p3, %p599_p0 }
  0x24   :  { %398 = vperm.xlu0 %596, %v352_v40   ;;  %296 = vperm.xlu1 %597, %v242_v41  }
  0x28   :  { %403 = vperm.xlu0 %596, %v353_v42   ;;  %301 = vperm.xlu1 %597, %v243_v43  }
  0x2c   :  { %408 = vperm.xlu0 %596, %v354_v44   ;;  %306 = vperm.xlu1 %597, %v244_v45  }
  0x30   :  { %413 = vperm.xlu0 %596, %v355_v46   ;;  %311 = vperm.xlu1 %597, %v245_v47  }
  0x34   :  { %418 = vperm.xlu0 %596, %v356_v48   ;;  %316 = vperm.xlu1 %597, %v246_v49  }
  0x38   :  { %423 = vperm.xlu0 %596, %v357_v50   ;;  %321 = vperm.xlu1 %597, %v247_v51  }
  0x3c   :  { %428 = vperm.xlu0 %596, %v358_v52   ;;  %326 = vperm.xlu1 %597, %v248_v53  }
  0x40   :  { %433 = vperm.xlu0 %596, %v359_v54   ;;  %438 = vperm.xlu1 %597, %v360_v55  }
  0x82   :  { %v252_v56 = vpop.permute.xlu0 %251  ;;  %v262_v57 = vpop.permute.xlu1 %261 }
  0x86   :  { %v257_v58 = vpop.permute.xlu0 %256 }
  0x87   :  { %v267_v59 = vpop.permute.xlu1 %266 }
  0x8a   :  { %v364_v60 = vpop.permute.xlu0 %363 }
  0x8b   :  { %v369_v61 = vpop.permute.xlu1 %368 }
  0x8f   :  { %v374_v62 = vpop.permute.xlu0 %373  ;;  %v272_v63 = vpop.permute.xlu1 %271 }
  0x93   :  { %v379_v0 = vpop.permute.xlu0 %378  ;;  %v277_v1 = vpop.permute.xlu1 %276 }
  0x97   :  { %v384_v2 = vpop.permute.xlu0 %383  ;;  %v282_v3 = vpop.permute.xlu1 %281 }
  0x9b   :  { %v389_v4 = vpop.permute.xlu0 %388  ;;  %v287_v5 = vpop.permute.xlu1 %286 }
  0x9f   :  { %v394_v6 = vpop.permute.xlu0 %393  ;;  %v292_v7 = vpop.permute.xlu1 %291 }
  0xa3   :  { %v399_v8 = vpop.permute.xlu0 %398  ;;  %v297_v9 = vpop.permute.xlu1 %296 }
  0xa7   :  { %v404_v10 = vpop.permute.xlu0 %403  ;;  %v302_v11 = vpop.permute.xlu1 %301 }
  0xab   :  { %v409_v12 = vpop.permute.xlu0 %408  ;;  %v307_v13 = vpop.permute.xlu1 %306 }
  0xaf   :  { %v414_v20 = vpop.permute.xlu0 %413  ;;  %v312_v21 = vpop.permute.xlu1 %311 }
  0xb3   :  { %v419_v42 = vpop.permute.xlu0 %418  ;;  %v317_v43 = vpop.permute.xlu1 %316 }
  0xe1   :  { %v558_v14 = vpop.f32.mrb[0].mxu0  ;;  %v570_v15 = vpop.f32.mrb[0].mxu1 }
  0xe2   :  { %v330_v16 = vmul.f32 %v558_v14, %v257_v58  ;;  %v154_v17 = vpop.f32.mrb[1].mxu0  ;;  %v194_v18 = vpop.f32.mrb[1].mxu1 }
  0xe3   :  { %v329_v19 = vmul.f32 %v252_v56, %v154_v17  ;;  %v337_v53 = vmul.f32 %v292_v7, %v194_v18 }
  0xe4   :  { %v442_v22 = vadd.f32 %v369_v61, %v330_v16 }
  0xe5   :  { %v441_v23 = vadd.f32 %v364_v60, %v329_v19  ;;  %v561_v24 = vpop.f32.mrb[2].mxu0  ;;  %v573_v25 = vpop.f32.mrb[2].mxu1 }
  0xe6   :  { %v458_v26 = vmul.f32 %v558_v14, %v442_v22  ;;  %v332_v27 = vmul.f32 %v561_v24, %v267_v59  ;;  %v164_v28 = vpop.f32.mrb[3].mxu0  ;;  %v204_v29 = vpop.f32.mrb[3].mxu1  ;;  %v340_v16 = vmul.f32 %v573_v25, %v307_v13 }
  0xe7   :  { %v457_v30 = vmul.f32 %v441_v23, %v154_v17  ;;  %v331_v31 = vmul.f32 %v262_v57, %v164_v28  ;;  %v338_v57 = vmul.f32 %v570_v15, %v297_v9 }
  0xe8   :  { %v444_v33 = vadd.f32 %v379_v0, %v332_v27  ;;  %v339_v0 = vmul.f32 %v302_v11, %v204_v29 }
  0xe9   :  { %v473_v32 = vadd.f32 %v458_v26, %v457_v30  ;;  %v443_v34 = vadd.f32 %v374_v62, %v331_v31  ;;  %v564_v35 = vpop.f32.mrb[4].mxu0  ;;  %v576_v36 = vpop.f32.mrb[4].mxu1  ;;  %v450_v14 = vadd.f32 %v409_v12, %v338_v57 }
  0xea   :  { %v334_v37 = vmul.f32 %v564_v35, %v277_v1  ;;  %v174_v38 = vpop.f32.mrb[5].mxu0  ;;  %v214_v39 = vpop.f32.mrb[5].mxu1  ;;  %v460_v44 = vmul.f32 %v561_v24, %v444_v33  ;;  %v451_v7 = vadd.f32 %v414_v20, %v339_v0  ;;  %v452_v24 = vadd.f32 %v419_v42, %v340_v16 }
  0xeb   :  { %v459_v40 = vmul.f32 %v443_v34, %v164_v28  ;;  %v333_v41 = vmul.f32 %v272_v63, %v174_v38  ;;  %v424_v62 = vpop.permute.xlu0 %423  ;;  %v449_v63 = vadd.f32 %v404_v10, %v337_v53  ;;  %v341_v22 = vmul.f32 %v312_v21, %v214_v39 }
  0xec   :  { %v446_v46 = vadd.f32 %v389_v4, %v334_v37  ;;  %v466_v9 = vmul.f32 %v570_v15, %v450_v14  ;;  %v342_v26 = vmul.f32 %v576_v36, %v317_v43  ;;  %v467_v27 = vmul.f32 %v451_v7, %v204_v29 }
  0xed   :  { %v474_v45 = vadd.f32 %v473_v32, %v459_v40  ;;  %v445_v47 = vadd.f32 %v384_v2, %v333_v41  ;;  %v567_v48 = vpop.f32.mrb[6].mxu0  ;;  %v579_v49 = vpop.f32.mrb[6].mxu1  ;;  %v465_v19 = vmul.f32 %v449_v63, %v194_v18  ;;  %v453_v10 = vadd.f32 %v424_v62, %v341_v22 }
  0xee   :  { %v336_v50 = vmul.f32 %v567_v48, %v287_v5  ;;  %v184_v51 = vpop.f32.mrb[7].mxu0  ;;  %v224_v52 = vpop.f32.mrb[7].mxu1  ;;  %v462_v58 = vmul.f32 %v564_v35, %v446_v46  ;;  %v468_v30 = vmul.f32 %v573_v25, %v452_v24 }
  0xef   :  { %v461_v54 = vmul.f32 %v445_v47, %v174_v38  ;;  %v475_v55 = vadd.f32 %v474_v45, %v460_v44  ;;  %v335_v56 = vmul.f32 %v282_v3, %v184_v51  ;;  %v322_v2 = vpop.permute.xlu1 %321  ;;  %v429_v3 = vpop.permute.xlu0 %428  ;;  %v469_v33 = vmul.f32 %v453_v10, %v214_v39 }
  0xf0   :  { %v448_v60 = vadd.f32 %v399_v8, %v336_v50  ;;  %v343_v28 = vmul.f32 %v322_v2, %v224_v52  ;;  %v454_v31 = vadd.f32 %v429_v3, %v342_v26 }
  0xf1   :  { %v476_v59 = vadd.f32 %v475_v55, %v461_v54  ;;  %v447_v61 = vadd.f32 %v394_v6, %v335_v56 }
  0xf2   :  { %v464_v5 = vmul.f32 %v567_v48, %v448_v60  ;;  %v470_v34 = vmul.f32 %v576_v36, %v454_v31 }
  0xf3   :  { %v463_v1 = vmul.f32 %v447_v61, %v184_v51  ;;  %v477_v4 = vadd.f32 %v476_v59, %v462_v58  ;;  %v327_v6 = vpop.permute.xlu1 %326  ;;  %v434_v32 = vpop.permute.xlu0 %433 }
  0xf4   :  { %v344_v12 = vmul.f32 %v579_v49, %v327_v6  ;;  %v455_v18 = vadd.f32 %v434_v32, %v343_v28 }
  0xf5   :  { %v478_v17 = vadd.f32 %v477_v4, %v463_v1 }
  0xf6   :  { %v471_v37 = vmul.f32 %v455_v18, %v224_v52 }
  0xf7   :  { %v479_v23 = vadd.f32 %v478_v17, %v464_v5  ;;  %v439_v21 = vpop.permute.xlu1 %438 }
  0xf8   :  { %v456_v35 = vadd.f32 %v439_v21, %v344_v12 }
  0xf9   :  { %v480_v8 = vadd.f32 %v479_v23, %v465_v19 }
  0xfa   :  { %v472_v40 = vmul.f32 %v579_v49, %v456_v35 }
  0xfb   :  { %v481_v11 = vadd.f32 %v480_v8, %v466_v9 }
  0xfd   :  { %v482_v13 = vadd.f32 %v481_v11, %v467_v27 }
  0xff   :  { %v483_v20 = vadd.f32 %v482_v13, %v468_v30 }
 0x101   :  { %v484_v15 = vadd.f32 %v483_v20, %v469_v33 }
 0x103   :  { %v485_v38 = vadd.f32 %v484_v15, %v470_v34 }
 0x105   :  { %v486_v41 = vadd.f32 %v485_v38, %v471_v37 }
 0x107   :  { %v487_v29 = vadd.f32 %v486_v41, %v472_v40 }
 0x109   :  { %v488_v42 = vrot.slane %v487_v29, 4 }
 0x10b   :  { %v489_v43 = vadd.f32 %v488_v42, %v487_v29 }
 0x10d   :  { %v490_v44 = vrot.slane %v489_v43, 2 }
 0x10f   :  { %v491_v25 = vadd.f32 %v490_v44, %v489_v43 }
 0x111   :  { %v492_v45 = vrot.slane %v491_v25, 1 }
 0x113   :  { %v493_v46 = vadd.f32 %v492_v45, %v491_v25 }
 0x115   :  { %494 = vst [vmem:[#allocation2] sm:$0x1] %v493_v46 }
 0x116   :  { %609 = shalt.err (!%p606_p4)
}
 0x117   :  { %s610_s1 = scalar_lea.hbm %s840_s4, 16 }
 0x118   :  { %p611_p5 = scmp.ne.s32.totalorder %s840_s4, %s610_s1  ;;  %p614_p6 = scmp.lt.u32.totalorder %s610_s1, %s840_s4 }
 0x11a   :  { %p616_p7 = pnand %p614_p6, %p611_p5 }
 0x11c   :  { %619 = shalt.err (!%p616_p7)
}
 0x11d   :  { %504 = dma.vmem_to_hbm [thread:$0]  %s502_s3, 16, %s840_s4, [#allocation3]  }
 0x11e   :  { %620 = dma.done.wait [#allocation3], 16  }
 0x11f   :  { %621 = vsyncadd [#allocation3], 4294967280 }
 0x120   :  { %508 = vsyncpa [#allocation3], 1 }

</bundles_post_ra>
